<compile_context>
chip_gen: v6e
topology: v6e:2x2x1
jax: 0.10.0
libtpu: 0.0.40
codegen_flags: <defaults>
</compile_context>

<pallas_src>
import functools

import jax
import jax.numpy as jnp
from jax.experimental import pallas as pl
from jax.experimental.pallas import tpu as pltpu

LANES = 128
MAX_BLOCK_ROWS = 2048      # (2048, 128) f32 = 1 MiB per input block
NUM_PARTIALS = 2           # leading parallel axis (2 TensorCores on v7x)


def _pow_abs(diff, l_num):
    # Static specialization of abs(diff ** l_num) for integer l_num >= 1.
    if l_num == 1:
        return jnp.abs(diff)
    if l_num == 2:
        return diff * diff
    if l_num % 2 == 0:
        return diff ** l_num          # even power is already non-negative
    return jnp.abs(diff) ** l_num     # odd power: |x^l| == |x|^l


def _intensity_loss_kernel(gen_ref, gt_ref, out_ref, *, l_num, rows,
                           block_rows, nb_per):
    p = pl.program_id(0)   # parallel partial index
    j = pl.program_id(1)   # reduction step within the partial

    @pl.when(j == 0)
    def _():
        out_ref[...] = jnp.zeros_like(out_ref)

    diff = gen_ref[...].astype(jnp.float32) - gt_ref[...].astype(jnp.float32)
    val = _pow_abs(diff, l_num)

    # Mask rows that fall outside the valid range (partial last block and
    # fully out-of-range blocks whose DMA index was clamped).
    gb = p * nb_per + j
    row_start = gb * block_rows
    row_ids = row_start + jax.lax.broadcasted_iota(jnp.int32, (block_rows, 1), 0)
    val = jnp.where(row_ids < rows, val, 0.0)

    # Fold the big tile down to one (8, 128) vreg with pure VPU adds and
    # accumulate into the resident output block (no per-step cross-lane reduce).
    out_ref[...] += val.reshape(block_rows // 8, 8, LANES).sum(axis=0)


def intensity_loss(gen_frames, gt_frames, l_num=2):
    assert gen_frames.shape == gt_frames.shape
    assert isinstance(l_num, int) and l_num >= 1, "l_num must be a static int >= 1"
    n_elem = gen_frames.size

    gen_flat = gen_frames.reshape(-1)
    gt_flat = gt_frames.reshape(-1)

    chunk = 8 * LANES                       # one f32 vreg worth of elements
    n_main = (n_elem // chunk) * chunk      # chunk-aligned prefix for the kernel

    total = jnp.zeros((), jnp.float32)

    if n_main:
        if n_main == n_elem:
            gen_main, gt_main = gen_flat, gt_flat     # zero-copy reshape path
        else:
            # TODO(synk): prefix slice materializes a copy for sizes that are
            # not a multiple of 1024 elements; only the <1024 tail is avoided.
            gen_main = gen_flat[:n_main]
            gt_main = gt_flat[:n_main]

        rows = n_main // LANES                         # multiple of 8
        gen2d = gen_main.reshape(rows, LANES)
        gt2d = gt_main.reshape(rows, LANES)

        block_rows = min(MAX_BLOCK_ROWS, rows)         # multiple of 8
        nb_total = pl.cdiv(rows, block_rows)
        nb_per = pl.cdiv(nb_total, NUM_PARTIALS)

        def in_map(p, j):
            # Clamp so out-of-range steps re-fetch a valid block; the in-kernel
            # row mask zeroes their contribution.
            return (jnp.minimum(p * nb_per + j, nb_total - 1), 0)

        kernel = functools.partial(
            _intensity_loss_kernel, l_num=l_num, rows=rows,
            block_rows=block_rows, nb_per=nb_per)

        itemsize = jnp.dtype(gen_frames.dtype).itemsize
        cost = pl.CostEstimate(
            flops=3 * n_main,
            transcendentals=0,
            bytes_accessed=2 * n_main * itemsize + NUM_PARTIALS * 8 * LANES * 4,
        )

        partials = pl.pallas_call(
            kernel,
            out_shape=jax.ShapeDtypeStruct((NUM_PARTIALS * 8, LANES), jnp.float32),
            grid_spec=pltpu.PrefetchScalarGridSpec(
                num_scalar_prefetch=0,
                grid=(NUM_PARTIALS, nb_per),
                in_specs=[
                    pl.BlockSpec((block_rows, LANES), in_map),
                    pl.BlockSpec((block_rows, LANES), in_map),
                ],
                out_specs=pl.BlockSpec((8, LANES), lambda p, j: (p, 0)),
            ),
            compiler_params=pltpu.CompilerParams(
                dimension_semantics=("parallel", "arbitrary")),
            cost_estimate=cost,
        )(gen2d, gt2d)

        total = total + jnp.sum(partials, dtype=jnp.float32)

    if n_main < n_elem:
        # Sub-1024-element tail: trivial, compute in plain JAX (no padding copy).
        gd = gen_flat[n_main:].astype(jnp.float32)
        td = gt_flat[n_main:].astype(jnp.float32)
        total = total + jnp.sum(_pow_abs(gd - td, l_num))

    return (total / n_elem).astype(jnp.float32)


if __name__ == "__main__":
    key = jax.random.PRNGKey(0)
    k1, k2, k3, k4 = jax.random.split(key, 4)

    l_num = 2  # module hyperparameter (self.l_num)

    # Small NCHW frames, consistent with the module's usage (aligned case).
    gen = jax.random.normal(k1, (2, 4, 16, 16), dtype=jnp.float32)
    gt = jax.random.normal(k2, (2, 4, 16, 16), dtype=jnp.float32)
    out = jax.block_until_ready(intensity_loss(gen, gt, l_num=l_num))
    ref = jnp.mean(jnp.abs((gen - gt) ** l_num))
    assert jnp.allclose(out, ref, rtol=1e-5, atol=1e-6), (out, ref)

    # Non-1024-aligned case exercises the masked/tail path.
    gen_b = jax.random.normal(k3, (2, 3, 15, 15), dtype=jnp.float32)
    gt_b = jax.random.normal(k4, (2, 3, 15, 15), dtype=jnp.float32)
    out_b = jax.block_until_ready(intensity_loss(gen_b, gt_b, l_num=l_num))
    ref_b = jnp.mean(jnp.abs((gen_b - gt_b) ** l_num))
    assert jnp.allclose(out_b, ref_b, rtol=1e-5, atol=1e-6), (out_b, ref_b)

    print("KERNEL_OK")
</pallas_src>

<mosaic_0001>
module attributes {stable_mosaic.version = 11 : i64} {
  func.func @_intensity_loss_kernel(%arg0: i32, %arg1: i32, %arg2: memref<16x128xf32, #tpu.memory_space<vmem>>, %arg3: memref<16x128xf32, #tpu.memory_space<vmem>>, %arg4: memref<8x128xf32, #tpu.memory_space<vmem>>) attributes {dimension_semantics = [#tpu.dimension_semantics<parallel>, #tpu.dimension_semantics<arbitrary>], iteration_bounds = array<i64: 2, 1>, scalar_prefetch = 0 : i64, scratch_operands = 0 : i64, tpu.core_type = #tpu.core_type<tc>, window_params = [{transform_indices = @transform_0, window_bounds = array<i64: 16, 128>}, {transform_indices = @transform_1, window_bounds = array<i64: 16, 128>}, {transform_indices = @transform_2, window_bounds = array<i64: 8, 128>}]} {
    %c0_i32 = arith.constant 0 : i32
    %0 = arith.cmpi eq, %arg1, %c0_i32 : i32
    %1 = arith.extui %0 : i1 to i32
    %c0_i32_0 = arith.constant 0 : i32
    %2 = arith.cmpi ne, %1, %c0_i32_0 : i32
    scf.if %2 {
      %cst_10 = arith.constant 0.000000e+00 : f32
      %24 = vector.broadcast %cst_10 : f32 to vector<8x128xf32>
      %c0_11 = arith.constant 0 : index
      %c0_12 = arith.constant 0 : index
      %25 = vector.load %arg4[%c0_11, %c0_12] : memref<8x128xf32, #tpu.memory_space<vmem>>, vector<8x128xf32>
      tpu.vector_store %arg4[%c0_11, %c0_12], %24 {strides = array<i32>} : memref<8x128xf32, #tpu.memory_space<vmem>>, vector<8x128xf32>,
    } else {
    }
    %c0 = arith.constant 0 : index
    %c0_1 = arith.constant 0 : index
    %3 = vector.load %arg2[%c0, %c0_1] : memref<16x128xf32, #tpu.memory_space<vmem>>, vector<16x128xf32>
    %c0_2 = arith.constant 0 : index
    %c0_3 = arith.constant 0 : index
    %4 = vector.load %arg3[%c0_2, %c0_3] : memref<16x128xf32, #tpu.memory_space<vmem>>, vector<16x128xf32>
    %5 = arith.subf %3, %4 : vector<16x128xf32>
    %6 = arith.mulf %5, %5 : vector<16x128xf32>
    %c1_i32 = arith.constant 1 : i32
    %7 = arith.muli %arg0, %c1_i32 : i32
    %8 = arith.addi %7, %arg1 : i32
    %c16_i32 = arith.constant 16 : i32
    %9 = arith.muli %8, %c16_i32 : i32
    %10 = tpu.iota {dimensions = array<i32: 0>} : vector<16x1xi32>
    %11 = vector.broadcast %9 : i32 to vector<16x1xi32>
    %12 = arith.addi %11, %10 : vector<16x1xi32>
    %c16_i32_4 = arith.constant 16 : i32
    %13 = vector.broadcast %c16_i32_4 : i32 to vector<16x1xi32>
    %14 = arith.cmpi slt, %12, %13 : vector<16x1xi32>
    %cst = arith.constant 0.000000e+00 : f32
    %15 = vector.shape_cast %14 : vector<16x1xi1> to vector<16x1xi1>
    %16 = vector.broadcast %15 : vector<16x1xi1> to vector<16x128xi1>
    %17 = vector.broadcast %cst : f32 to vector<16x128xf32>
    %18 = arith.select %16, %6, %17 : vector<16x128xi1>, vector<16x128xf32>
    %c0_5 = arith.constant 0 : index
    %c0_6 = arith.constant 0 : index
    %19 = vector.load %arg4[%c0_5, %c0_6] : memref<8x128xf32, #tpu.memory_space<vmem>>, vector<8x128xf32>
    %20 = vector.shape_cast %18 : vector<16x128xf32> to vector<2x8x128xf32>
    %cst_7 = arith.constant dense<0.000000e+00> : vector<8x128xf32>
    %21 = vector.multi_reduction <add>, %20, %cst_7 [0] : vector<2x8x128xf32> to vector<8x128xf32>
    %22 = arith.addf %19, %21 : vector<8x128xf32>
    %c0_8 = arith.constant 0 : index
    %c0_9 = arith.constant 0 : index
    %23 = vector.load %arg4[%c0_8, %c0_9] : memref<8x128xf32, #tpu.memory_space<vmem>>, vector<8x128xf32>
    tpu.vector_store %arg4[%c0_8, %c0_9], %22 {strides = array<i32>} : memref<8x128xf32, #tpu.memory_space<vmem>>, vector<8x128xf32>,
    return
  }
  func.func @transform_0(%arg0: i32, %arg1: i32) -> (i32, i32) {
    %c1_i32 = arith.constant 1 : i32
    %0 = arith.muli %arg0, %c1_i32 : i32
    %1 = arith.addi %0, %arg1 : i32
    %c0_i32 = arith.constant 0 : i32
    %2 = arith.minsi %1, %c0_i32 : i32
    %c0_i32_0 = arith.constant 0 : i32
    %c0_i32_1 = arith.constant 0 : i32
    return %2, %c0_i32_0 : i32, i32
  }
  func.func @transform_1(%arg0: i32, %arg1: i32) -> (i32, i32) {
    %c1_i32 = arith.constant 1 : i32
    %0 = arith.muli %arg0, %c1_i32 : i32
    %1 = arith.addi %0, %arg1 : i32
    %c0_i32 = arith.constant 0 : i32
    %2 = arith.minsi %1, %c0_i32 : i32
    %c0_i32_0 = arith.constant 0 : i32
    %c0_i32_1 = arith.constant 0 : i32
    return %2, %c0_i32_0 : i32, i32
  }
  func.func @transform_2(%arg0: i32, %arg1: i32) -> (i32, i32) {
    %c0_i32 = arith.constant 0 : i32
    %c0_i32_0 = arith.constant 0 : i32
    return %arg0, %c0_i32 : i32, i32
  }
}

</mosaic_0001>

<bundles_post_ra>
// kernel: tpu_custom_call.1
= control target key start
LH: loop header
LB: loop body
LE: loop exit
PB: predicated region body
PF: predicated region fallthrough
CT: control target
= control target key end

     0   :  { %7 = vsyncpa [#allocation3], 0  ;;  %s865_s0 = inlined_call_operand.hbm [shape: f32[16,128], index: 0, kind: input, shape index: {}]   ;;  %s866_s1 = inlined_call_operand.hbm [shape: f32[16,128], index: 1, kind: input, shape index: {}]   ;;  %s867_s2 = inlined_call_operand.hbm [shape: f32[16,128], index: 2, kind: output, shape index: {}]  }
   0x1   :  { %9 = vsyncpa [#allocation3 + $0x1], 0 }
   0x2   :  { %10 = vsyncpa [#allocation6], 0 }
   0x3   :  { %12 = vsyncpa [#allocation6 + $0x1], 0 }
   0x4   :  { %13 = vsyncpa [#allocation4], 0 }
   0x5   :  { %15 = vsyncpa [#allocation4 + $0x1], 0  ;;  %s686_s9 = smov 0   ;;  %s688_s10 = smov 0  }
   0x6   :  { %s690_s11 = smov 0   ;;  %s692_s12 = smov 0  }
   0x7   :  { %s694_s13 = smov 0   ;;  %s696_s14 = smov 0  }
   0x8   :  { %s698_s15 = smov 0   ;;  %s700_s16 = smov 0  }
   0x9 LB: > { %s388_s17 = sadd.s32 4294967295, %s664_s16   ;;  %s389_s18 = sadd.s32 4294967294, %s664_s16   ;;  %s664_s16 = sphi %s700_s16, %s21_s16   ;;  %s660_s15 = sphi %s698_s15, %s886_s15   ;;  %s656_s14 = sphi %s696_s14, %s885_s14   ;;  %s652_s13 = sphi %s694_s13, %s855_s13   ;;  %s648_s12 = sphi %s692_s12, %s884_s12   ;;  %s644_s11 = sphi %s690_s11, %s883_s11   ;;  %s640_s10 = sphi %s688_s10, %s882_s10   ;;  %s636_s9 = sphi %s686_s9, %s881_s9  }
   0xa   : > { %s33_s19 = sadd.s32 1, %s660_s15  ;;  %p633_p1 = scmp.ne.s32.totalorder %s652_s13, 0 }
   0xb   : > { %p35_p0 = scmp.ge.s32.totalorder %s33_s19, 2  ;;  %p54_p2 = scmp.eq.s32.totalorder %s664_s16, 0 }
   0xc   : > { %p59_p3 = scmp.ne.s32.totalorder %s652_s13, %s648_s12  ;;  %p60_p5 = scmp.eq.s32.totalorder %s388_s17, 0 }
   0xd   : > { %s888_s19 = smov (%p35_p0, %s33_s19), 0  ;;  %p732_p4 = por %p633_p1, %p54_p2 }
   0xe   : > { %p736_p6 = por %p60_p5, %p59_p3  ;;  %s101_s22 = ssub.s32 %s660_s15, %s888_s19 }
   0xf   : > { %p102_p7 = scmp.eq.s32.totalorder %s101_s22, 0  ;;  %s104_s23 = sadd.s32 1, %s644_s11 }
  0x10   : > { %s871_s21 = scalar_select %p736_p6, 1, 0 }
  0x11   : > { %s744_s24 = scalar_select %p102_p7, %s644_s11, %s104_s23  }
  0x12   : > { %p114_p8 = scmp.ne.s32.totalorder %s644_s11, %s640_s10  ;;  %p115_p9 = scmp.eq.s32.totalorder %s388_s17, 1 }
  0x13   : > { %p120_p10 = scmp.ne.s32.totalorder %s640_s10, %s636_s9  ;;  %p121_p11 = scmp.eq.s32.totalorder %s389_s18, 1 }
  0x14   : > { %p750_p12 = por %p115_p9, %p114_p8  ;;  %p426_p1 = scmp.lt.s32.totalorder %s664_s16, 2 }
  0x15   : > { %p755_p0 = por %p121_p11, %p120_p10  ;;  %s666_s27 = smov [#allocation2]  }
  0x16   : > { %s872_s25 = scalar_select %p750_p12, 1, 0 }
  0x17   : > { %s873_s26 = scalar_select %p755_p0, 1, 0 }
  0x18   : > { %s155_s28 = sshll.u32 %s666_s27, 4  ;;  %p762_p2 = pnand %p426_p1, %p732_p4  ;;  %s156_s28 = int_to_ptr.vmem [resolvable:$true] %s155_s28 }
  0x19   : > { %s503_s4 = scalar_lea.hbm %s865_s0, 256 }
  0x1a   : > { %p504_p3 = scmp.ne.s32.totalorder %s865_s0, %s503_s4  ;;  %p505_p5 = pneg %p762_p2 }
  0x1b   : > { %p510_p8 = scmp.lt.s32.totalorder %s503_s4, %s503_s4 }
  0x1c   : > { %p506_p7 = pnand %p505_p5, %p504_p3 }
  0x1e   : > { %p507_p4 = pneg %p506_p7 }
  0x20   : > { %p512_p9 = pnand %p510_p8, %p507_p4 }
  0x22   : > { %515 = shalt.err (!%p512_p9)
}
  0x23   : > { %s516_s7 = scalar_lea.vmem %s156_s28, 256  ;;  %s523_s8 = scalar_lea.vmem %s156_s28, 512 }
  0x24   : > { %p517_p10 = scmp.ne.s32.totalorder %s156_s28, %s516_s7  ;;  %p524_p13 = scmp.lt.s32.totalorder %s156_s28, %s156_s28 }
  0x25   : > { %p525_p0 = scmp.lt.s32.totalorder %s523_s8, %s516_s7 }
  0x26   : > { %p519_p11 = pnand %p517_p10, %p505_p5 }
  0x27   : > { %p526_p12 = por %p525_p0, %p524_p13 }
  0x28   : > { %p520_p1 = pneg %p519_p11 }
  0x2a   : > { %p527_p6 = pnand %p526_p12, %p520_p1 }
  0x2c   : > { %530 = shalt.err (!%p527_p6)
}
  0x2d   : > { %s667_s12 = smov 128   ;;  %s668_s17 = smov 8  }
  0x2e   : > { %418 = dma.hbm_to_vmem [thread:$0]  (!%p762_p2), %s865_s0, 256, %s156_s28, [#allocation3], %s667_s12, %s667_s12, %s668_s17  }
  0x2f   : > { %p398_p3 = scmp.ge.s32.totalorder %s664_s16, 1  ;;  %p187_p7 = scmp.lt.s32.totalorder %s664_s16, 3 }
  0x30   : > { %s669_s23 = smov [#allocation5]   ;;  %s531_s4 = scalar_lea.hbm %s866_s1, 256 }
  0x31   : > { %p787_p4 = pnand %p398_p3, %p187_p7  ;;  %s179_s27 = sshll.u32 %s669_s23, 4  ;;  %s180_s27 = int_to_ptr.vmem [resolvable:$true] %s179_s27 }
  0x32   : > { %p532_p6 = scmp.ne.s32.totalorder %s866_s1, %s531_s4  ;;  %p538_p0 = scmp.lt.s32.totalorder %s531_s4, %s531_s4 }
  0x33   : > { %s875_s22 = scalar_select %p787_p4, 1, 0 }
  0x34   : > { %p534_p12 = pnand %p532_p6, %p505_p5 }
  0x36   : > { %p535_p13 = pneg %p534_p12 }
  0x38   : > { %p540_p8 = pnand %p538_p0, %p535_p13 }
  0x3a   : > { %543 = shalt.err (!%p540_p8)
}
  0x3b   : > { %s544_s28 = scalar_lea.vmem %s180_s27, 256  ;;  %s551_s7 = scalar_lea.vmem %s180_s27, 512 }
  0x3c   : > { %p545_p9 = scmp.ne.s32.totalorder %s180_s27, %s544_s28  ;;  %p552_p1 = scmp.lt.s32.totalorder %s180_s27, %s180_s27 }
  0x3d   : > { %p553_p3 = scmp.lt.s32.totalorder %s551_s7, %s544_s28 }
  0x3e   : > { %p547_p10 = pnand %p545_p9, %p505_p5 }
  0x3f   : > { %p554_p7 = por %p553_p3, %p552_p1 }
  0x40   : > { %p548_p11 = pneg %p547_p10 }
  0x42   : > { %p555_p4 = pnand %p554_p7, %p548_p11 }
  0x44   : > { %558 = shalt.err (!%p555_p4)
}
  0x45   : > { %421 = dma.hbm_to_vmem [thread:$0]  (!%p762_p2), %s866_s1, 256, %s180_s27, [#allocation6], %s667_s12, %s667_s12, %s668_s17  }
  0x46   : > { %p876_p6 = scmp.ne.s32.totalorder %s875_s22, 0 }
  0x47   : > { %s193_s20 = sand.u32 (!%p876_p6), 1, %s652_s13   ;;  %p877_p5 = scmp.ne.s32.totalorder (!%p876_p6), %s871_s21, 0 }
  0x48   : > { %191 = sbr.rel (%p876_p6) target bundleno = 106 (0x6a), region = 28  ;;  %s399_s23 = sshll.u32 (!%p876_p6), %s193_s20, 4 }
  0x49   : > { %s194_s30 = scalar_lea.sflag (!%p876_p6), [#allocation3], %s193_s20  ;;  %s197_s3 = scalar_lea.vmem (!%p876_p6), [#allocation2], %s399_s23 }
  0x4d   : > { %622 = dma.done.wait (%p877_p5), %s194_s30, 256  }
  0x4e   : > { %624 = vsyncadd (%p877_p5), %s194_s30, 4294967040  ;;  %s203_s29 = scalar_lea.sflag [#allocation6], %s193_s20  ;;  %s206_s4 = scalar_lea.vmem [#allocation5], %s399_s23 }
  0x4f   : > { %626 = dma.done.wait (%p877_p5), %s203_s29, 256  }
  0x50   : > { %628 = vsyncadd (%p877_p5), %s203_s29, 4294967040  ;;  %s402_s12 = sshll.u32 %s656_s14, 4  ;;  %v255_v0 = vlaneseq  ;;  %s229_s17 = sand.u32 1, %s640_s10   ;;  %v245_v6 = vld [vmem:[%s197_s3] sm:$0xff]  ;;  %v246_v7 = vld [vmem:[%s197_s3 + $0x8] sm:$0xff] }
  0x51   : > { %v258_v2 = vstv %s402_s12  ;;  %s401_s22 = sshll.u32 %s229_s17, 3  ;;  %v247_v8 = vld [vmem:[%s206_s4] sm:$0xff]  ;;  %v248_v9 = vld [vmem:[%s206_s4 + $0x8] sm:$0xff]  ;;  %s404_s21 = sshll.u32 %s656_s14, 7 }
  0x52   : > { %v256_v1 = vshrl.u32 %v255_v0, 7  ;;  %v249_v10 = vsub.f32 %v245_v6, %v247_v8  ;;  %v250_v11 = vsub.f32 %v246_v7, %v248_v9  ;;  %s231_s27 = scalar_lea.vmem [#allocation7], %s401_s22  ;;  %s285_s7 = scalar_lea.hbm %s867_s2, %s404_s21 }
  0x53   : > { %s287_s5 = sshll.u32 %s231_s27, 4  ;;  %s274_s8 = scalar_lea.sflag [#allocation4], %s229_s17  ;;  %s288_s5 = int_to_ptr.vmem [resolvable:$true] %s287_s5 }
  0x54   : > { %v257_v3 = vadd.s32 8, %v256_v1  ;;  %v259_v4 = vadd.s32 %v258_v2, %v256_v1  ;;  %v251_v12 = vmul.f32 %v249_v10, %v249_v10  ;;  %v252_v13 = vmul.f32 %v250_v11, %v250_v11  ;;  %s559_s18 = scalar_lea.vmem %s288_s5, 128  ;;  %p878_p4 = scmp.ne.s32.totalorder %s872_s25, 0 }
  0x55   : > { %p560_p2 = scmp.ne.s32.totalorder %s288_s5, %s559_s18  ;;  %s670_s20 = smov [#allocation7]  }
  0x56   : > { %v260_v5 = vadd.s32 %v258_v2, %v257_v3  ;;  %vm261_vm0 = vcmp.lt.s32.totalorder %v259_v4, 16  ;;  %s563_s23 = sshll.u32 %s670_s20, 4  ;;  %s564_s23 = int_to_ptr.vmem [resolvable:$false] %s563_s23 }
  0x57   : > { %v267_v14 = vsel %vm261_vm0, %v251_v12, 0.0  ;;  %p561_p12 = pnand %p560_p2, %p878_p4  ;;  %s565_s30 = scalar_lea.vmem %s564_s23, 256 }
  0x58   : > { %vm262_vm1 = vcmp.lt.s32.totalorder %v260_v5, 16  ;;  %p566_p0 = scmp.lt.s32.totalorder %s288_s5, %s564_s23  ;;  %p567_p8 = scmp.lt.s32.totalorder %s565_s30, %s559_s18 }
  0x59   : > { %v268_v15 = vsel %vm262_vm1, %v252_v13, 0.0  ;;  %p562_p13 = pneg %p561_p12 }
  0x5a   : > { %v270_v16 = vadd.f32 %v268_v15, %v267_v14  ;;  %p568_p9 = por %p567_p8, %p566_p0 }
  0x5c   : > { %272 = vst [vmem:[%s231_s27] sm:$0xff] %v270_v16  ;;  %p569_p10 = pnand %p568_p9, %p562_p13 }
  0x5e   : > { %572 = shalt.err (!%p569_p10)
}
  0x5f   : > { %s573_s14 = scalar_lea.hbm %s285_s7, 128  ;;  %s577_s4 = scalar_lea.hbm %s867_s2, 256 }
  0x60   : > { %p574_p11 = scmp.ne.s32.totalorder %s285_s7, %s573_s14  ;;  %p578_p7 = scmp.lt.s32.totalorder %s285_s7, %s867_s2 }
  0x61   : > { %p579_p6 = scmp.lt.s32.totalorder %s577_s4, %s573_s14 }
  0x62   : > { %p575_p1 = pnand %p574_p11, %p878_p4 }
  0x63   : > { %p580_p5 = por %p579_p6, %p578_p7 }
  0x64   : > { %p576_p3 = pneg %p575_p1 }
  0x66   : > { %p581_p2 = pnand %p580_p5, %p576_p3 }
  0x68   : > { %584 = shalt.err (!%p581_p2)
}
  0x69   : > { %413 = dma.vmem_to_hbm [thread:$0]  (%p878_p4), %s288_s5, 128, %s285_s7, %s274_s8  }
  0x6a PF: > { %s299_s22 = sand.u32 1, %s636_s9   ;;  %p879_p12 = scmp.ne.s32.totalorder %s873_s26, 0 }
  0x6b   : > { %p880_p13 = scmp.ge.s32.totalorder %s664_s16, 2  ;;  %s300_s21 = scalar_lea.sflag [#allocation4], %s299_s22 }
  0x6d   : > { %p423_p0 = pnand %p880_p13, %p879_p12 }
  0x6f   : > { %p424_p8 = pneg %p423_p0 }
  0x71   : > { %630 = dma.done.wait (%p424_p8), %s300_s21, 128  }
  0x72   : > { %632 = vsyncadd (%p424_p8), %s300_s21, 4294967168  ;;  %s21_s16 = sadd.s32 1, %s664_s16   ;;  %s881_s9 = smov %s640_s10 }
  0x73   : > { %p18_p9 = scmp.ge.s32.totalorder %s21_s16, 4   ;;  %s882_s10 = smov %s644_s11 }
  0x74   : > { %s883_s11 = smov %s744_s24  ;;  %s884_s12 = smov %s652_s13 }
  0x75   : > { %s855_s13 = smov 0   ;;  %s885_s14 = smov %s660_s15 }
  0x76   : > { %s886_s15 = smov %s888_s19  ;;  %20 = sbr.rel (!%p18_p9) target bundleno = 9 (0x9), region = 90 }
  0x7b   :  { %305 = vsyncpa [#allocation3], 1 }
  0x7c   :  { %307 = vsyncpa [#allocation3 + $0x1], 1 }
  0x7d   :  { %308 = vsyncpa [#allocation6], 1 }
  0x7e   :  { %310 = vsyncpa [#allocation6 + $0x1], 1 }
  0x7f   :  { %311 = vsyncpa [#allocation4], 1 }
  0x80   :  { %313 = vsyncpa [#allocation4 + $0x1], 1 }

</bundles_post_ra>
